<compile_context>
chip_gen: v7x
topology: tpu7x:2x2x1
jax: 0.10.0
libtpu: 0.0.40
codegen_flags: <defaults>
</compile_context>

<pallas_src>
import functools

import jax
import jax.numpy as jnp
import numpy as np
from jax.experimental import pallas as pl
from jax.experimental.pallas import tpu as pltpu


def _round_up(x, m):
    return ((x + m - 1) // m) * m


# ----------------------------------------------------------------------------
# VMEM budgeting / tile selection
# ----------------------------------------------------------------------------
def _vmem_budget_bytes():
    """Scoped-VMEM budget: ~75% of physical VMEM, capped at 96 MiB."""
    try:
        cap = int(pltpu.get_tpu_info().vmem_capacity_bytes)
    except Exception:
        cap = 64 * 2 ** 20  # conservative fallback (v7x per-core VMEM)
    return min(96 * 2 ** 20, int(cap * 0.75))


def _vmem_bytes(tile_hw, cin_p, cf, ka_pad, kc_pad, emit_cam, cam_itemsize):
    """Conservative per-step VMEM estimate (double-buffered blocks + temps)."""
    n = 4 * 2 * cin_p * tile_hw                               # x input blocks
    n += 4 * 2 * (cf * cin_p + cf + ka_pad * cf + ka_pad)     # weights / biases
    n += 4 * 2 * ka_pad + 4 * cf                              # logits blocks + acc
    n += 4 * cf * tile_hw                                     # feat temporary
    if emit_cam:
        n += cam_itemsize * 2 * kc_pad * tile_hw              # cam out blocks
        n += 4 * 2 * (kc_pad * cf + kc_pad)                   # cam weights / bias
        n += 4 * kc_pad * tile_hw                             # cam temporary
    return n


def _pick_tile_hw(hw, cin_p, cf, ka_pad, kc_pad, emit_cam, cam_itemsize, budget):
    cands = [k * 128 for k in range(hw // 128, 0, -1) if hw % (k * 128) == 0]
    if not cands:
        return hw                                             # tiny map: one full tile
    for cand in cands:
        if _vmem_bytes(cand, cin_p, cf, ka_pad, kc_pad,
                       emit_cam, cam_itemsize) * 1.25 <= budget:
            return cand
    return cands[-1]


# ----------------------------------------------------------------------------
# Fused kernel: backbone projection + pooled-logits heads + CAM heads
# ----------------------------------------------------------------------------
def _fused_kernel(*refs, inv_hw, mxu_dtype, emit_cam):
    """One (batch, HW-tile) grid step, channel-major everywhere.

    refs (emit_cam=True):
      x_ref      (1, Cin_pad, tile_hw)   lane-dense input pixels
      wbb_ref    (Cf, Cin_pad)           backbone 1x1-conv weight (resident)
      bbb_ref    (Cf, 1)                 backbone bias
      wha_ref    (Ka_pad, Cf)            ALL head weights (pooled logits)
      bha_ref    (Ka_pad, 1)             ALL head biases
      whc_ref    (Kc_pad, Cf)            CAM-head weights only
      bhc_ref    (Kc_pad, 1)             CAM-head biases only
      logits_ref (1, Ka_pad, 1)          per-batch pooled logits (last tile)
      cam_ref    (1, Kc_pad, tile_hw)    lane-dense CAM tile
      acc_ref    (Cf, 1)                 running HW-sum of features (scratch)
    """
    if emit_cam:
        (x_ref, wbb_ref, bbb_ref, wha_ref, bha_ref, whc_ref, bhc_ref,
         logits_ref, cam_ref, acc_ref) = refs
    else:
        (x_ref, wbb_ref, bbb_ref, wha_ref, bha_ref,
         logits_ref, acc_ref) = refs

    t = pl.program_id(1)

    @pl.when(t == 0)
    def _():
        acc_ref[...] = jnp.zeros_like(acc_ref)

    x = x_ref[0]                                             # (Cin_pad, tile_hw)

    # TODO(synk): the pretrained torchvision backbone `self.net` is not
    # reproducible in-script; this deterministic 1x1-conv + ReLU projection
    # stands in for it.
    feat = jnp.dot(wbb_ref[...].astype(mxu_dtype), x.astype(mxu_dtype),
                   preferred_element_type=jnp.float32) + bbb_ref[...]
    feat = jnp.maximum(feat, 0.0)                            # (Cf, tile_hw), f32

    # Running HW-sum of features on the MXU (feat @ ones) -> pooled heads.
    ones_col = jnp.ones((feat.shape[1], 1), jnp.float32)
    acc_ref[...] += jnp.dot(feat, ones_col, preferred_element_type=jnp.float32)

    if emit_cam:
        cam = jnp.dot(whc_ref[...].astype(mxu_dtype), feat.astype(mxu_dtype),
                      preferred_element_type=jnp.float32) + bhc_ref[...]
        cam_ref[0] = cam.astype(cam_ref.dtype)               # (Kc_pad, tile_hw)

    @pl.when(t == pl.num_programs(1) - 1)
    def _():
        mean_feat = acc_ref[...] * inv_hw                    # (Cf, 1)
        lg = jnp.dot(wha_ref[...], mean_feat,
                     preferred_element_type=jnp.float32) + bha_ref[...]
        logits_ref[0] = lg                                   # (Ka_pad, 1)


def _fused_forward(x_cm, wbb_t, bbb, wha_t, bha, whc_t, bhc, *,
                   tile_hw, mxu_dtype, cam_dtype, emit_cam, vmem_budget):
    B, cin_p, HW = x_cm.shape
    cf = wbb_t.shape[0]
    ka_pad = wha_t.shape[0]
    kc_pad = whc_t.shape[0] if emit_cam else 0
    num_t = HW // tile_hw
    inv_hw = 1.0 / float(HW)
    cam_itemsize = jnp.dtype(cam_dtype).itemsize

    kernel = functools.partial(_fused_kernel, inv_hw=inv_hw,
                               mxu_dtype=mxu_dtype, emit_cam=emit_cam)

    in_specs = [
        pl.BlockSpec((1, cin_p, tile_hw), lambda b, t: (b, 0, t)),
        pl.BlockSpec((cf, cin_p), lambda b, t: (0, 0)),
        pl.BlockSpec((cf, 1), lambda b, t: (0, 0)),
        pl.BlockSpec((ka_pad, cf), lambda b, t: (0, 0)),
        pl.BlockSpec((ka_pad, 1), lambda b, t: (0, 0)),
    ]
    inputs = [x_cm, wbb_t, bbb, wha_t, bha]
    out_specs = [pl.BlockSpec((1, ka_pad, 1), lambda b, t: (b, 0, 0))]
    out_shapes = [jax.ShapeDtypeStruct((B, ka_pad, 1), jnp.float32)]
    if emit_cam:
        in_specs += [pl.BlockSpec((kc_pad, cf), lambda b, t: (0, 0)),
                     pl.BlockSpec((kc_pad, 1), lambda b, t: (0, 0))]
        inputs += [whc_t, bhc]
        out_specs.append(pl.BlockSpec((1, kc_pad, tile_hw), lambda b, t: (b, 0, t)))
        out_shapes.append(jax.ShapeDtypeStruct((B, kc_pad, HW), cam_dtype))

    est = _vmem_bytes(tile_hw, cin_p, cf, ka_pad, kc_pad, emit_cam, cam_itemsize)
    vmem_limit = int(min(vmem_budget, max(32 * 2 ** 20, 2 * est)))

    grid_spec = pltpu.PrefetchScalarGridSpec(
        num_scalar_prefetch=0,
        grid=(B, num_t),                      # reduction (HW) axis last
        in_specs=in_specs,
        out_specs=tuple(out_specs),
        scratch_shapes=[pltpu.VMEM((cf, 1), jnp.float32)],
    )

    outs = pl.pallas_call(
        kernel,
        out_shape=tuple(out_shapes),
        grid_spec=grid_spec,
        compiler_params=pltpu.CompilerParams(
            dimension_semantics=("parallel", "arbitrary"),
            vmem_limit_bytes=vmem_limit,
        ),
    )(*inputs)

    if emit_cam:
        logits, cam = outs
    else:
        (logits,) = outs
        cam = None
    return logits[:, :, 0], cam               # logits: (B, Ka_pad)


# ----------------------------------------------------------------------------
# Forward wrapper (mirrors SimpleNet.forward)
# ----------------------------------------------------------------------------
def simplenet_forward(params, x, cls_cols_dict, gen_cam_map=True,
                      tile_hw=None, mxu_dtype=jnp.float32,
                      cam_dtype=jnp.float32):
    """x is NCHW (PyTorch convention). Returns (cls_logits, cls_maps) like the
    torch module; regression / binary-classifier logits are computed inside
    the same fused kernel but not returned, as in torch's forward."""
    B, Cin, H, W = x.shape
    HW = H * W

    # Channel-major: pure reshape of NCHW (no transpose); pad channels to 8.
    cin_p = _round_up(Cin, 8)
    x_cm = x.reshape(B, Cin, HW)
    if cin_p != Cin:
        x_cm = jnp.pad(x_cm, ((0, 0), (0, cin_p - Cin), (0, 0)))

    wbb_t = jnp.pad(params["bb_w"].T, ((0, 0), (0, cin_p - Cin)))   # (Cf, Cin_pad)
    bbb = params["bb_b"].reshape(-1, 1)                             # (Cf, 1)
    cf = wbb_t.shape[0]

    # All heads -> pooled logits via ONE (Ka, Cf) weight matrix (8-padded).
    heads = [("__reg__", params["reg_w"], params["reg_b"]),
             ("__bin__", params["bin_w"], params["bin_b"])]
    for name in cls_cols_dict:
        w, b = params["cls"][name]
        heads.append((name, w, b))
    k_sizes = [w.shape[1] for _, w, _ in heads]
    k_total = sum(k_sizes)
    ka_pad = _round_up(k_total, 8)
    wha_t = jnp.pad(jnp.concatenate([w.T for _, w, _ in heads], axis=0),
                    ((0, ka_pad - k_total), (0, 0)))                # (Ka_pad, Cf)
    bha = jnp.pad(jnp.concatenate([b for _, _, b in heads], axis=1),
                  ((0, 0), (0, ka_pad - k_total))).reshape(-1, 1)   # (Ka_pad, 1)

    offsets, off = {}, 0
    for (name, _, _), k in zip(heads, k_sizes):
        offsets[name] = (off, k)
        off += k

    # CAM group: ONLY classifier heads with < 100 classes (the maps torch returns).
    cam_heads = [(n,) + tuple(params["cls"][n])
                 for n, ncls in cls_cols_dict.items() if ncls < 100]
    emit_cam = bool(gen_cam_map) and len(cam_heads) > 0
    if emit_cam:
        kc_sizes = [w.shape[1] for _, w, _ in cam_heads]
        kc_total = sum(kc_sizes)
        kc_pad = _round_up(kc_total, 8)
        whc_t = jnp.pad(jnp.concatenate([w.T for _, w, _ in cam_heads], axis=0),
                        ((0, kc_pad - kc_total), (0, 0)))           # (Kc_pad, Cf)
        bhc = jnp.pad(jnp.concatenate([b for _, _, b in cam_heads], axis=1),
                      ((0, 0), (0, kc_pad - kc_total))).reshape(-1, 1)
        cam_offsets, coff = {}, 0
        for (name, _, _), k in zip(cam_heads, kc_sizes):
            cam_offsets[name] = (coff, k)
            coff += k
    else:
        kc_pad, whc_t, bhc, cam_offsets = 0, None, None, {}

    budget = _vmem_budget_bytes()
    if tile_hw is None:
        tile_hw = _pick_tile_hw(HW, cin_p, cf, ka_pad, kc_pad, emit_cam,
                                jnp.dtype(cam_dtype).itemsize, budget)
    assert HW % tile_hw == 0 and (tile_hw % 128 == 0 or tile_hw == HW), (
        "tile_hw must divide H*W and be a multiple of 128 (or the full H*W)")

    logits_all, cam_all = _fused_forward(
        x_cm, wbb_t, bbb, wha_t, bha, whc_t, bhc,
        tile_hw=tile_hw, mxu_dtype=mxu_dtype, cam_dtype=cam_dtype,
        emit_cam=emit_cam, vmem_budget=budget)

    # regressor / binary classifier: computed (as in torch) but not returned.
    ro, rk = offsets["__reg__"]
    bo, bk = offsets["__bin__"]
    _reg_logits = logits_all[:, ro:ro + rk]
    _bin_logits = logits_all[:, bo:bo + bk]

    cls_logits, cls_maps = [], []
    for name, ncls in cls_cols_dict.items():
        o, k = offsets[name]
        cls_logits.append(logits_all[:, o:o + k])
        if emit_cam and name in cam_offsets:
            co, ck = cam_offsets[name]
            cls_maps.append(cam_all[:, co:co + ck, :].reshape(B, ck, H, W))
    return cls_logits, cls_maps


# ----------------------------------------------------------------------------
# Pure-JAX reference (for correctness check)
# ----------------------------------------------------------------------------
def _reference_forward(params, x, cls_cols_dict, gen_cam_map=True):
    feat = jnp.einsum("bchw,cf->bfhw", x, params["bb_w"]) \
        + params["bb_b"].reshape(1, -1, 1, 1)
    feat = jnp.maximum(feat, 0.0)
    pooled = feat.mean(axis=(2, 3))
    cls_logits, cls_maps = [], []
    for name, ncls in cls_cols_dict.items():
        w, b = params["cls"][name]
        cls_logits.append(pooled @ w + b)
        if gen_cam_map and ncls < 100:
            cam = jnp.einsum("bfhw,fk->bkhw", feat, w) + b.reshape(1, -1, 1, 1)
            cls_maps.append(cam)
    return cls_logits, cls_maps


# ----------------------------------------------------------------------------
# Deterministic parameter construction
# ----------------------------------------------------------------------------
def make_params(key, cin, in_features, n_reg, n_bin, cls_cols_dict):
    keys = jax.random.split(key, 8 + 2 * len(cls_cols_dict))
    ki = iter(range(len(keys)))

    def lin(cout, cin_, k1, k2):
        # weight stored as (Cin, Cout) (torch stores (Cout, Cin))
        s = 1.0 / jnp.sqrt(jnp.float32(cin_))
        w = jax.random.uniform(keys[k1], (cin_, cout), jnp.float32, -s, s)
        b = jax.random.uniform(keys[k2], (1, cout), jnp.float32, -s, s)
        return w, b

    params = {}
    params["bb_w"], params["bb_b"] = lin(in_features, cin, next(ki), next(ki))
    params["reg_w"], params["reg_b"] = lin(n_reg, in_features, next(ki), next(ki))
    params["bin_w"], params["bin_b"] = lin(n_bin, in_features, next(ki), next(ki))
    params["cls"] = {}
    for name, ncls in cls_cols_dict.items():
        params["cls"][name] = lin(ncls, in_features, next(ki), next(ki))
    return params


# ----------------------------------------------------------------------------
if __name__ == "__main__":
    key = jax.random.PRNGKey(0)
    k_par, k_in = jax.random.split(key)

    B, Cin, H, W = 2, 3, 16, 16
    in_features = 128
    n_regression_cols = 2
    n_binary_cls_cols = 3
    cls_cols_dict = {"task_a": 4, "task_b": 5}

    params = make_params(k_par, Cin, in_features,
                         n_regression_cols, n_binary_cls_cols, cls_cols_dict)
    x = jax.random.normal(k_in, (B, Cin, H, W), dtype=jnp.float32)  # NCHW input

    # tile_hw=128 exercises the multi-tile pipelined / accumulator path.
    cls_logits, cls_maps = simplenet_forward(params, x, cls_cols_dict,
                                             gen_cam_map=True, tile_hw=128)
    jax.block_until_ready((cls_logits, cls_maps))

    assert [tuple(t.shape) for t in cls_logits] == [(B, 4), (B, 5)]
    assert [tuple(t.shape) for t in cls_maps] == [(B, 4, H, W), (B, 5, H, W)]

    # Numerical check against the pure-JAX reference.
    ref_logits, ref_maps = _reference_forward(params, x, cls_cols_dict)
    for got, ref in zip(cls_logits, ref_logits):
        np.testing.assert_allclose(np.asarray(got), np.asarray(ref),
                                   rtol=2e-3, atol=2e-3)
    for got, ref in zip(cls_maps, ref_maps):
        np.testing.assert_allclose(np.asarray(got), np.asarray(ref),
                                   rtol=2e-3, atol=2e-3)

    # Exercise the no-CAM fast path (no CAM output at all) with auto tile.
    cls_logits2, cls_maps2 = simplenet_forward(params, x, cls_cols_dict,
                                               gen_cam_map=False)
    jax.block_until_ready(cls_logits2)
    assert cls_maps2 == []
    for got, ref in zip(cls_logits2, ref_logits):
        np.testing.assert_allclose(np.asarray(got), np.asarray(ref),
                                   rtol=2e-3, atol=2e-3)

    print("KERNEL_OK")
</pallas_src>

<mosaic_0001>
module attributes {stable_mosaic.version = 11 : i64} {
  func.func @_fused_kernel(%arg0: i32, %arg1: i32, %arg2: memref<1x8x128xf32, #tpu.memory_space<vmem>>, %arg3: memref<128x8xf32, #tpu.memory_space<vmem>>, %arg4: memref<128x1xf32, #tpu.memory_space<vmem>>, %arg5: memref<16x128xf32, #tpu.memory_space<vmem>>, %arg6: memref<16x1xf32, #tpu.memory_space<vmem>>, %arg7: memref<16x128xf32, #tpu.memory_space<vmem>>, %arg8: memref<16x1xf32, #tpu.memory_space<vmem>>, %arg9: memref<1x16x1xf32, #tpu.memory_space<vmem>>, %arg10: memref<1x16x128xf32, #tpu.memory_space<vmem>>, %arg11: memref<128x1xf32, #tpu.memory_space<vmem>>) attributes {dimension_semantics = [#tpu.dimension_semantics<parallel>, #tpu.dimension_semantics<arbitrary>], iteration_bounds = array<i64: 2, 2>, scalar_prefetch = 0 : i64, scratch_operands = 1 : i64, tpu.core_type = #tpu.core_type<tc>, window_params = [{transform_indices = @transform_0, window_bounds = array<i64: 1, 8, 128>}, {pipeline_mode = #tpu.pipeline_mode<synchronous>, transform_indices = @transform_1, window_bounds = array<i64: 128, 8>}, {pipeline_mode = #tpu.pipeline_mode<synchronous>, transform_indices = @transform_2, window_bounds = array<i64: 128, 1>}, {pipeline_mode = #tpu.pipeline_mode<synchronous>, transform_indices = @transform_3, window_bounds = array<i64: 16, 128>}, {pipeline_mode = #tpu.pipeline_mode<synchronous>, transform_indices = @transform_4, window_bounds = array<i64: 16, 1>}, {pipeline_mode = #tpu.pipeline_mode<synchronous>, transform_indices = @transform_5, window_bounds = array<i64: 16, 128>}, {pipeline_mode = #tpu.pipeline_mode<synchronous>, transform_indices = @transform_6, window_bounds = array<i64: 16, 1>}, {transform_indices = @transform_7, window_bounds = array<i64: 1, 16, 1>}, {transform_indices = @transform_8, window_bounds = array<i64: 1, 16, 128>}]} {
    %c0_i32 = arith.constant 0 : i32
    %0 = arith.cmpi eq, %arg1, %c0_i32 : i32
    %1 = arith.extui %0 : i1 to i32
    %c0_i32_0 = arith.constant 0 : i32
    %2 = arith.cmpi ne, %1, %c0_i32_0 : i32
    scf.if %2 {
      %cst_23 = arith.constant 0.000000e+00 : f32
      %28 = vector.broadcast %cst_23 : f32 to vector<128x1xf32>
      %c0_24 = arith.constant 0 : index
      %c0_25 = arith.constant 0 : index
      %29 = vector.load %arg11[%c0_24, %c0_25] : memref<128x1xf32, #tpu.memory_space<vmem>>, vector<128x1xf32>
      tpu.vector_store %arg11[%c0_24, %c0_25], %28 {strides = array<i32>} : memref<128x1xf32, #tpu.memory_space<vmem>>, vector<128x1xf32>,
    } else {
    }
    %c0 = arith.constant 0 : index
    %c0_1 = arith.constant 0 : index
    %c0_2 = arith.constant 0 : index
    %3 = vector.load %arg2[%c0, %c0_1, %c0_2] : memref<1x8x128xf32, #tpu.memory_space<vmem>>, vector<1x8x128xf32>
    %4 = vector.shape_cast %3 : vector<1x8x128xf32> to vector<8x128xf32>
    %c0_3 = arith.constant 0 : index
    %c0_4 = arith.constant 0 : index
    %5 = vector.load %arg3[%c0_3, %c0_4] : memref<128x8xf32, #tpu.memory_space<vmem>>, vector<128x8xf32>
    %cst = arith.constant dense<0.000000e+00> : vector<128x128xf32>
    %6 = tpu.matmul %5, %4, %cst {dimension_numbers = #tpu.dot_dimension_numbers<[1], [0], [0], [1], [0, 0, 1, 1], [], []>} : vector<128x8xf32>, vector<8x128xf32>, vector<128x128xf32> -> vector<128x128xf32>
    %c0_5 = arith.constant 0 : index
    %c0_6 = arith.constant 0 : index
    %7 = vector.load %arg4[%c0_5, %c0_6] : memref<128x1xf32, #tpu.memory_space<vmem>>, vector<128x1xf32>
    %8 = vector.broadcast %7 : vector<128x1xf32> to vector<128x128xf32>
    %9 = arith.addf %6, %8 : vector<128x128xf32>
    %cst_7 = arith.constant 0.000000e+00 : f32
    %10 = vector.broadcast %cst_7 : f32 to vector<128x128xf32>
    %11 = arith.maximumf %9, %10 : vector<128x128xf32>
    %cst_8 = arith.constant 1.000000e+00 : f32
    %12 = vector.broadcast %cst_8 : f32 to vector<128x1xf32>
    %c0_9 = arith.constant 0 : index
    %c0_10 = arith.constant 0 : index
    %13 = vector.load %arg11[%c0_9, %c0_10] : memref<128x1xf32, #tpu.memory_space<vmem>>, vector<128x1xf32>
    %cst_11 = arith.constant dense<0.000000e+00> : vector<128x1xf32>
    %14 = tpu.matmul %11, %12, %cst_11 {dimension_numbers = #tpu.dot_dimension_numbers<[1], [0], [0], [1], [0, 0, 1, 1], [], []>} : vector<128x128xf32>, vector<128x1xf32>, vector<128x1xf32> -> vector<128x1xf32>
    %15 = arith.addf %13, %14 : vector<128x1xf32>
    %c0_12 = arith.constant 0 : index
    %c0_13 = arith.constant 0 : index
    %16 = vector.load %arg11[%c0_12, %c0_13] : memref<128x1xf32, #tpu.memory_space<vmem>>, vector<128x1xf32>
    tpu.vector_store %arg11[%c0_12, %c0_13], %15 {strides = array<i32>} : memref<128x1xf32, #tpu.memory_space<vmem>>, vector<128x1xf32>,
    %c0_14 = arith.constant 0 : index
    %c0_15 = arith.constant 0 : index
    %17 = vector.load %arg7[%c0_14, %c0_15] : memref<16x128xf32, #tpu.memory_space<vmem>>, vector<16x128xf32>
    %cst_16 = arith.constant dense<0.000000e+00> : vector<16x128xf32>
    %18 = tpu.matmul %17, %11, %cst_16 {dimension_numbers = #tpu.dot_dimension_numbers<[1], [0], [0], [1], [0, 0, 1, 1], [], []>} : vector<16x128xf32>, vector<128x128xf32>, vector<16x128xf32> -> vector<16x128xf32>
    %c0_17 = arith.constant 0 : index
    %c0_18 = arith.constant 0 : index
    %19 = vector.load %arg8[%c0_17, %c0_18] : memref<16x1xf32, #tpu.memory_space<vmem>>, vector<16x1xf32>
    %20 = vector.broadcast %19 : vector<16x1xf32> to vector<16x128xf32>
    %21 = arith.addf %18, %20 : vector<16x128xf32>
    %c0_19 = arith.constant 0 : index
    %c0_20 = arith.constant 0 : index
    %c0_21 = arith.constant 0 : index
    %22 = vector.load %arg10[%c0_19, %c0_20, %c0_21] : memref<1x16x128xf32, #tpu.memory_space<vmem>>, vector<1x16x128xf32>
    %23 = vector.shape_cast %22 : vector<1x16x128xf32> to vector<16x128xf32>
    %24 = vector.shape_cast %21 : vector<16x128xf32> to vector<1x16x128xf32>
    tpu.vector_store %arg10[%c0_19, %c0_20, %c0_21], %24 {strides = array<i32>} : memref<1x16x128xf32, #tpu.memory_space<vmem>>, vector<1x16x128xf32>,
    %c1_i32 = arith.constant 1 : i32
    %25 = arith.cmpi eq, %arg1, %c1_i32 : i32
    %26 = arith.extui %25 : i1 to i32
    %c0_i32_22 = arith.constant 0 : i32
    %27 = arith.cmpi ne, %26, %c0_i32_22 : i32
    scf.if %27 {
      %c0_23 = arith.constant 0 : index
      %c0_24 = arith.constant 0 : index
      %28 = vector.load %arg11[%c0_23, %c0_24] : memref<128x1xf32, #tpu.memory_space<vmem>>, vector<128x1xf32>
      %cst_25 = arith.constant 3.906250e-03 : f32
      %29 = vector.broadcast %cst_25 : f32 to vector<128x1xf32>
      %30 = arith.mulf %28, %29 : vector<128x1xf32>
      %c0_26 = arith.constant 0 : index
      %c0_27 = arith.constant 0 : index
      %31 = vector.load %arg5[%c0_26, %c0_27] : memref<16x128xf32, #tpu.memory_space<vmem>>, vector<16x128xf32>
      %cst_28 = arith.constant dense<0.000000e+00> : vector<16x1xf32>
      %32 = tpu.matmul %31, %30, %cst_28 {dimension_numbers = #tpu.dot_dimension_numbers<[1], [0], [0], [1], [0, 0, 1, 1], [], []>} : vector<16x128xf32>, vector<128x1xf32>, vector<16x1xf32> -> vector<16x1xf32>
      %c0_29 = arith.constant 0 : index
      %c0_30 = arith.constant 0 : index
      %33 = vector.load %arg6[%c0_29, %c0_30] : memref<16x1xf32, #tpu.memory_space<vmem>>, vector<16x1xf32>
      %34 = arith.addf %32, %33 : vector<16x1xf32>
      %c0_31 = arith.constant 0 : index
      %c0_32 = arith.constant 0 : index
      %c0_33 = arith.constant 0 : index
      %35 = vector.load %arg9[%c0_31, %c0_32, %c0_33] : memref<1x16x1xf32, #tpu.memory_space<vmem>>, vector<1x16x1xf32>
      %36 = vector.shape_cast %35 : vector<1x16x1xf32> to vector<16x1xf32>
      %37 = vector.shape_cast %34 : vector<16x1xf32> to vector<1x16x1xf32>
      tpu.vector_store %arg9[%c0_31, %c0_32, %c0_33], %37 {strides = array<i32>} : memref<1x16x1xf32, #tpu.memory_space<vmem>>, vector<1x16x1xf32>,
    } else {
    }
    return
  }
  func.func @transform_0(%arg0: i32, %arg1: i32) -> (i32, i32, i32) {
    %c0_i32 = arith.constant 0 : i32
    %c0_i32_0 = arith.constant 0 : i32
    return %arg0, %c0_i32, %arg1 : i32, i32, i32
  }
  func.func @transform_1(%arg0: i32, %arg1: i32) -> (i32, i32) {
    %c0_i32 = arith.constant 0 : i32
    %c0_i32_0 = arith.constant 0 : i32
    %c0_i32_1 = arith.constant 0 : i32
    return %c0_i32, %c0_i32_0 : i32, i32
  }
  func.func @transform_2(%arg0: i32, %arg1: i32) -> (i32, i32) {
    %c0_i32 = arith.constant 0 : i32
    %c0_i32_0 = arith.constant 0 : i32
    %c0_i32_1 = arith.constant 0 : i32
    return %c0_i32, %c0_i32_0 : i32, i32
  }
  func.func @transform_3(%arg0: i32, %arg1: i32) -> (i32, i32) {
    %c0_i32 = arith.constant 0 : i32
    %c0_i32_0 = arith.constant 0 : i32
    %c0_i32_1 = arith.constant 0 : i32
    return %c0_i32, %c0_i32_0 : i32, i32
  }
  func.func @transform_4(%arg0: i32, %arg1: i32) -> (i32, i32) {
    %c0_i32 = arith.constant 0 : i32
    %c0_i32_0 = arith.constant 0 : i32
    %c0_i32_1 = arith.constant 0 : i32
    return %c0_i32, %c0_i32_0 : i32, i32
  }
  func.func @transform_5(%arg0: i32, %arg1: i32) -> (i32, i32) {
    %c0_i32 = arith.constant 0 : i32
    %c0_i32_0 = arith.constant 0 : i32
    %c0_i32_1 = arith.constant 0 : i32
    return %c0_i32, %c0_i32_0 : i32, i32
  }
  func.func @transform_6(%arg0: i32, %arg1: i32) -> (i32, i32) {
    %c0_i32 = arith.constant 0 : i32
    %c0_i32_0 = arith.constant 0 : i32
    %c0_i32_1 = arith.constant 0 : i32
    return %c0_i32, %c0_i32_0 : i32, i32
  }
  func.func @transform_7(%arg0: i32, %arg1: i32) -> (i32, i32, i32) {
    %c0_i32 = arith.constant 0 : i32
    %c0_i32_0 = arith.constant 0 : i32
    %c0_i32_1 = arith.constant 0 : i32
    return %arg0, %c0_i32, %c0_i32_0 : i32, i32, i32
  }
  func.func @transform_8(%arg0: i32, %arg1: i32) -> (i32, i32, i32) {
    %c0_i32 = arith.constant 0 : i32
    %c0_i32_0 = arith.constant 0 : i32
    return %arg0, %c0_i32, %arg1 : i32, i32, i32
  }
}

</mosaic_0001>

<bundles_post_ra>
// kernel: tpu_custom_call.1
= control target key start
LH: loop header
LB: loop body
LE: loop exit
PB: predicated region body
PF: predicated region fallthrough
CT: control target
= control target key end

     0   :  { %14 = vsyncpa [#allocation4], 0  ;;  %s2123_s0 = inlined_call_operand.vmem [shape: f32[2,8,256], index: 0, kind: input, shape index: {}]   ;;  %s2124_s1 = inlined_call_operand.vmem [shape: f32[128,8], index: 1, kind: input, shape index: {}]   ;;  %s2125_s2 = inlined_call_operand.vmem [shape: f32[128,1], index: 2, kind: input, shape index: {}]   ;;  %s2126_s3 = inlined_call_operand.vmem [shape: f32[16,128], index: 3, kind: input, shape index: {}]   ;;  %s2127_s4 = inlined_call_operand.vmem [shape: f32[16,1], index: 4, kind: input, shape index: {}]   ;;  %s2128_s5 = inlined_call_operand.vmem [shape: f32[16,128], index: 5, kind: input, shape index: {}]   ;;  %s2129_s6 = inlined_call_operand.vmem [shape: f32[16,1], index: 6, kind: input, shape index: {}]   ;;  %s2130_s7 = inlined_call_operand.vmem [shape: f32[2,16,1], index: 7, kind: output, shape index: {0}]   ;;  %s2131_s8 = inlined_call_operand.hbm [shape: f32[2,16,256], index: 8, kind: output, shape index: {1}]  }
   0x1   :  { %16 = vsyncpa [#allocation4 + $0x1], 0  ;;  %s1795_s27 = smov 0   ;;  %s1797_s28 = smov 0  }
   0x2   :  { %s1799_s29 = smov 0   ;;  %s1801_s30 = smov 0  }
   0x3   :  { %s1803_s9 = smov 0   ;;  %s1805_s10 = smov 0  }
   0x4   :  { %s1807_s11 = smov 0   ;;  %s1809_s12 = smov 0  }
   0x5 LB: > { %2137 = sst [smem:[#allocation6_spill]] %s1721_s29  ;;  %s1217_s13 = sadd.s32 4294967295, %s1741_s12   ;;  %s1741_s12 = sphi %s1809_s12, %s22_s12   ;;  %s1737_s11 = sphi %s1807_s11, %s2150_s11   ;;  %s1733_s10 = sphi %s1805_s10, %s2149_s10   ;;  %s1729_s9 = sphi %s1803_s9, %s2155_s9   ;;  %s1725_s30 = sphi %s1801_s30, %s2154_s30   ;;  %s1721_s29 = sphi %s1799_s29, %s2153_s29   ;;  %s1717_s28 = sphi %s1797_s28, %s2152_s28   ;;  %s1713_s27 = sphi %s1795_s27, %s2151_s27  }
   0x6   : > { %2138 = sst [smem:[#allocation7_spill]] %s1733_s10  ;;  %s1218_s14 = sadd.s32 4294967294, %s1741_s12  }
   0x7   : > { %2139 = sst [smem:[#allocation8_spill]] %s1737_s11  ;;  %s31_s15 = sadd.s32 1, %s1733_s10 }
   0x8   : > { %p32_p0 = scmp.ge.s32.totalorder %s31_s15, 2  ;;  %s34_s16 = sadd.s32 1, %s1737_s11 }
   0x9   : > { %p233_p1 = scmp.ne.s32.totalorder %s1721_s29, %s1717_s28  ;;  %p234_p2 = scmp.eq.s32.totalorder %s1217_s13, 3 }
   0xa   : > { %s2157_s15 = smov (%p32_p0, %s31_s15), 0  ;;  %s2159_s16 = smov (!%p32_p0, %s34_s16), %s1737_s11 }
   0xb   : > { %2140 = sst [smem:[#allocation9_spill]] %s2157_s15  ;;  %s219_s17 = ssub.s32 %s1733_s10, %s2157_s15 }
   0xc   : > { %p1846_p3 = por %p234_p2, %p233_p1  ;;  %p36_p4 = scmp.ge.s32.totalorder %s2159_s16, 2 }
   0xd   : > { %p239_p5 = scmp.ne.s32.totalorder %s1717_s28, %s1713_s27  ;;  %p240_p6 = scmp.eq.s32.totalorder %s1218_s14, 3 }
   0xe   : > { %p1221_p7 = scmp.ge.s32.totalorder %s1741_s12, 1  ;;  %s2161_s16 = smov (%p36_p4, %s2159_s16), 0 }
   0xf   : > { %2142 = sst [smem:[#allocation10_spill]] %s2161_s16  ;;  %p1855_p8 = por %p240_p6, %p239_p5 }
  0x10   : > { %p287_p9 = scmp.lt.s32.totalorder %s1741_s12, 5  ;;  %s218_s20 = ssub.s32 %s1737_s11, %s2161_s16 }
  0x11   : > { %s223_s21 = sadd.s32 1, %s1721_s29  ;;  %s220_s22 = sor.u32 %s219_s17, %s218_s20 }
  0x12   : > { %p288_p10 = pnand %p1221_p7, %p287_p9  ;;  %p221_p11 = scmp.eq.s32.totalorder %s220_s22, 0 }
  0x13   : > { %s326_s24 = sand.u32 (!%p288_p10), 1, %s1717_s28   ;;  %p329_p12 = scmp.lt.s32.totalorder (!%p288_p10), %s1729_s9, 1 }
  0x14   : > { %s1864_s23 = scalar_select %p221_p11, %s1721_s29, %s223_s21  }
  0x15   : > { %291 = sbr.rel (%p288_p10) target bundleno = 763 (0x2fb), region = 48  ;;  %s1222_s25 = sshll.u32 (!%p288_p10), %s326_s24, 4 }
  0x16   : > { %2144 = sst [smem:[#allocation11_spill]] %s1864_s23  ;;  %p331_p13 = scmp.lt.s32.totalorder (!%p288_p10), %s1725_s30, 1 }
  0x17   : > { %s1881_s29 = scalar_lea.vmem (!%p288_p10), [#allocation3], %s1222_s25  ;;  %p1227_p0 = scmp.ne.s32.totalorder (!%p288_p10), %s1725_s30, 0 }
  0x1c   : > { %s330_s26 = scalar_select %p329_p12, %s1729_s9, 1 }
  0x1d   : > { %s332_s13 = scalar_select %p331_p13, %s1725_s30, 1 }
  0x1e   : > { %s1223_s14 = sshll.u32 %s330_s26, 1  ;;  %s1250_s17 = sshll.u32 %s330_s26, 4  ;;  %vm346_vm0 = vcmask (!%p1227_p0), 7168   ;;  %v1743_v0 = vmov (!%p1227_p0), 0.0  }
  0x1f   : > { %s334_s20 = sadd.s32 %s1223_s14, %s332_s13  ;;  %s1876_s16 = scalar_lea.vmem %s2130_s7, %s1250_s17  ;;  %347 = vst.msk [vmem:[#allocation2] sm:$0xff] (!%p1227_p0), %vm346_vm0, %v1743_v0  ;;  %348 = vst.msk [vmem:[#allocation2 + $0x8] sm:$0xff] (!%p1227_p0), %vm346_vm0, %v1743_v0 }
  0x20   : > { %s1224_s15 = sshll.u32 %s334_s20, 3  ;;  %345 = sbr.rel (%p1227_p0) target bundleno = 39 (0x27), region = 52  ;;  %349 = vst.msk [vmem:[#allocation2 + $0x10] sm:$0xff] (!%p1227_p0), %vm346_vm0, %v1743_v0  ;;  %350 = vst.msk [vmem:[#allocation2 + $0x18] sm:$0xff] (!%p1227_p0), %vm346_vm0, %v1743_v0 }
  0x21   : > { %s336_s23 = scalar_lea.vmem %s2123_s0, %s1224_s15  ;;  %351 = vst.msk [vmem:[#allocation2 + $0x20] sm:$0xff] (!%p1227_p0), %vm346_vm0, %v1743_v0  ;;  %352 = vst.msk [vmem:[#allocation2 + $0x28] sm:$0xff] (!%p1227_p0), %vm346_vm0, %v1743_v0 }
  0x22   : > { %353 = vst.msk [vmem:[#allocation2 + $0x30] sm:$0xff] (!%p1227_p0), %vm346_vm0, %v1743_v0  ;;  %354 = vst.msk [vmem:[#allocation2 + $0x38] sm:$0xff] (!%p1227_p0), %vm346_vm0, %v1743_v0 }
  0x23   : > { %355 = vst.msk [vmem:[#allocation2 + $0x40] sm:$0xff] (!%p1227_p0), %vm346_vm0, %v1743_v0  ;;  %356 = vst.msk [vmem:[#allocation2 + $0x48] sm:$0xff] (!%p1227_p0), %vm346_vm0, %v1743_v0 }
  0x24   : > { %357 = vst.msk [vmem:[#allocation2 + $0x50] sm:$0xff] (!%p1227_p0), %vm346_vm0, %v1743_v0  ;;  %358 = vst.msk [vmem:[#allocation2 + $0x58] sm:$0xff] (!%p1227_p0), %vm346_vm0, %v1743_v0 }
  0x25   : > { %359 = vst.msk [vmem:[#allocation2 + $0x60] sm:$0xff] (!%p1227_p0), %vm346_vm0, %v1743_v0  ;;  %360 = vst.msk [vmem:[#allocation2 + $0x68] sm:$0xff] (!%p1227_p0), %vm346_vm0, %v1743_v0 }
  0x26   : > { %361 = vst.msk [vmem:[#allocation2 + $0x70] sm:$0xff] (!%p1227_p0), %vm346_vm0, %v1743_v0  ;;  %362 = vst.msk [vmem:[#allocation2 + $0x78] sm:$0xff] (!%p1227_p0), %vm346_vm0, %v1743_v0 }
  0x27 PF: > { %v363_v1 = vld [vmem:[%s336_s23] sm:$0xff]  ;;  %vm476_vm1 = vcmask 64512   ;;  %v365_v3 = vld [vmem:[%s2124_s1 + $0x8] sm:$0xff]  ;;  %v366_v4 = vld [vmem:[%s2124_s1 + $0x10] sm:$0xff]  ;;  %v1744_v5 = vmov 0   ;;  %vm863_vm2 = vcmask 7168  }
  0x28   : > { %v364_v2 = vld [vmem:[%s2124_s1] sm:$0xff]  ;;  %1336 = vmatprep.subr.mxu0 %v363_v1  ;;  %1645 = vset.pattern.permute.xlu0 %v1744_v5  ;;  %v367_v6 = vld [vmem:[%s2124_s1 + $0x18] sm:$0xff]  ;;  %v382_v9 = vld [vmem:[%s2125_s2 + $0x10] sm:$0xff]  ;;  %v1745_v18 = vmov 1.0|1.0   ;;  %p1244_p1 = scmp.ne.s32.totalorder %s1725_s30, 1 }
  0x29   : > { %1338 = vmatprep.mubr.msk.f32.mxu0 %vm476_vm1, %v364_v2  ;;  %1337 = vmatpush3.msra.mxu0 %v363_v1  ;;  %v368_v7 = vld [vmem:[%s2124_s1 + $0x20] sm:$0xff]  ;;  %v381_v10 = vld [vmem:[%s2125_s2 + $0x8] sm:$0xff]  ;;  %v383_v12 = vld [vmem:[%s2125_s2 + $0x18] sm:$0xff] }
  0x2a   : > { %1339 = vmatmul.mubr.msk.f32.vlgmr.msra.gmra.mrb[0].mxu0 %vm476_vm1, %v365_v3  ;;  %1646 = vset.pattern.permute.xlu1 %v1744_v5  ;;  %v380_v8 = vld [vmem:[%s2125_s2] sm:$0xff]  ;;  %v369_v11 = vld [vmem:[%s2124_s1 + $0x28] sm:$0xff]  ;;  %v370_v13 = vld [vmem:[%s2124_s1 + $0x30] sm:$0xff] }
  0x2b   : > { %1341 = vmatprep.mubr.msk.f32.mxu0 %vm476_vm1, %v366_v4  ;;  %398 = vperm.xlu0 %1645, %v380_v8   ;;  %v384_v14 = vld [vmem:[%s2125_s2 + $0x20] sm:$0xff]  ;;  %v371_v15 = vld [vmem:[%s2124_s1 + $0x38] sm:$0xff]  ;;  %v385_v16 = vld [vmem:[%s2125_s2 + $0x28] sm:$0xff] }
  0x2c   : > { %408 = vperm.xlu1 %1646, %v382_v9   ;;  %v372_v17 = vld [vmem:[%s2124_s1 + $0x40] sm:$0xff]  ;;  %1488 = vmatprep.subr.bf16.mxu1 %v1745_v18  ;;  %v386_v19 = vld [vmem:[%s2125_s2 + $0x30] sm:$0xff]  ;;  %v373_v20 = vld [vmem:[%s2124_s1 + $0x48] sm:$0xff] }
  0x2d   : > { %v387_v21 = vld [vmem:[%s2125_s2 + $0x38] sm:$0xff]  ;;  %1489 = vmatpush3.bf16.msra.mxu1 %v1745_v18  ;;  %v374_v22 = vld [vmem:[%s2124_s1 + $0x50] sm:$0xff]  ;;  %v388_v23 = vld [vmem:[%s2125_s2 + $0x40] sm:$0xff] }
  0x2e   : > { %1342 = vmatmul.mubr.msk.f32.gmra.mrb[2].mxu0 %vm476_vm1, %v367_v6  ;;  %1490 = vmatprep.subr.bf16.mxu1 %v1745_v18  ;;  %v375_v24 = vld [vmem:[%s2124_s1 + $0x58] sm:$0xff]  ;;  %v389_v25 = vld [vmem:[%s2125_s2 + $0x48] sm:$0xff]  ;;  %v376_v26 = vld [vmem:[%s2124_s1 + $0x60] sm:$0xff] }
  0x2f   : > { %1344 = vmatprep.mubr.msk.f32.mxu0 %vm476_vm1, %v368_v7  ;;  %403 = vperm.xlu0 %1645, %v381_v10   ;;  %v390_v27 = vld [vmem:[%s2125_s2 + $0x50] sm:$0xff]  ;;  %v377_v28 = vld [vmem:[%s2124_s1 + $0x68] sm:$0xff]  ;;  %v391_v29 = vld [vmem:[%s2125_s2 + $0x58] sm:$0xff] }
  0x30   : > { %413 = vperm.xlu1 %1646, %v383_v12   ;;  %v378_v30 = vld [vmem:[%s2124_s1 + $0x70] sm:$0xff]  ;;  %v392_v31 = vld [vmem:[%s2125_s2 + $0x60] sm:$0xff]  ;;  %v379_v32 = vld [vmem:[%s2124_s1 + $0x78] sm:$0xff] }
  0x31   : > { %1491 = vmatpush3.bf16.msra.mxu1 %v1745_v18  ;;  %v393_v33 = vld [vmem:[%s2125_s2 + $0x68] sm:$0xff]  ;;  %v394_v34 = vld [vmem:[%s2125_s2 + $0x70] sm:$0xff]  ;;  %v395_v35 = vld [vmem:[%s2125_s2 + $0x78] sm:$0xff] }
  0x32   : > { %1345 = vmatmul.mubr.msk.f32.gmra.mrb[4].mxu0 %vm476_vm1, %v369_v11  ;;  %1492 = vmatprep.subr.bf16.mxu1 %v1745_v18  ;;  %v882_v36 = vld [vmem:[%s2129_s6] sm:$0xff]  ;;  %v883_v37 = vld [vmem:[%s2129_s6 + $0x8] sm:$0xff] }
  0x33   : > { %1347 = vmatprep.mubr.msk.f32.mxu0 %vm476_vm1, %v370_v13  ;;  %418 = vperm.xlu0 %1645, %v384_v14   ;;  %v880_v38 = vld [vmem:[%s2128_s5] sm:$0xff] }
  0x34   : > { %423 = vperm.xlu1 %1646, %v385_v16  }
  0x35   : > { %1493 = vmatpush3.bf16.msra.mxu1 %v1745_v18 }
  0x36   : > { %1348 = vmatmul.mubr.msk.f32.gmra.mrb[6].mxu0 %vm476_vm1, %v371_v15  ;;  %1494 = vmatprep.subr.bf16.mxu1 %v1745_v18 }
  0x37   : > { %1350 = vmatprep.mubr.msk.f32.mxu0 %vm476_vm1, %v372_v17  ;;  %428 = vperm.xlu0 %1645, %v386_v19  }
  0x38   : > { %433 = vperm.xlu1 %1646, %v387_v21  }
  0x39   : > { %1495 = vmatpush3.bf16.msra.mxu1 %v1745_v18 }
  0x3a   : > { %1351 = vmatmul.mubr.msk.f32.gmra.mrb[8].mxu0 %vm476_vm1, %v373_v20  ;;  %1496 = vmatprep.subr.bf16.mxu1 %v1745_v18 }
  0x3b   : > { %1353 = vmatprep.mubr.msk.f32.mxu0 %vm476_vm1, %v374_v22  ;;  %438 = vperm.xlu0 %1645, %v388_v23  }
  0x3c   : > { %443 = vperm.xlu1 %1646, %v389_v25  }
  0x3d   : > { %1497 = vmatpush3.bf16.msra.mxu1 %v1745_v18 }
  0x3e   : > { %1354 = vmatmul.mubr.msk.f32.gmra.mrb[10].mxu0 %vm476_vm1, %v375_v24  ;;  %1498 = vmatprep.subr.bf16.mxu1 %v1745_v18 }
  0x3f   : > { %1356 = vmatprep.mubr.msk.f32.mxu0 %vm476_vm1, %v376_v26  ;;  %448 = vperm.xlu0 %1645, %v390_v27  }
  0x40   : > { %453 = vperm.xlu1 %1646, %v391_v29  }
  0x41   : > { %1499 = vmatpush3.bf16.msra.mxu1 %v1745_v18 }
  0x42   : > { %1357 = vmatmul.mubr.msk.f32.gmra.mrb[12].mxu0 %vm476_vm1, %v377_v28  ;;  %1500 = vmatprep.subr.bf16.mxu1 %v1745_v18 }
  0x43   : > { %1359 = vmatprep.mubr.msk.f32.mxu0 %vm476_vm1, %v378_v30  ;;  %458 = vperm.xlu0 %1645, %v392_v31  }
  0x44   : > { %463 = vperm.xlu1 %1646, %v393_v33  }
  0x45   : > { %1501 = vmatpush3.bf16.msra.mxu1 %v1745_v18 }
  0x46   : > { %1360 = vmatmul.mubr.msk.f32.gmra.mrb[14].mxu0 %vm476_vm1, %v379_v32  ;;  %1502 = vmatprep.subr.bf16.mxu1 %v1745_v18 }
  0x47   : > { %468 = vperm.xlu0 %1645, %v394_v34   ;;  %1450 = vmatprep.mubr.f32.mxu0 %v880_v38 }
  0x48   : > { %473 = vperm.xlu1 %1646, %v395_v35  }
  0x49   : > { %1503 = vmatpush3.bf16.msra.mxu1 %v1745_v18 }
  0x4b   : > { %886 = vperm.xlu0 %1645, %v882_v36  }
  0x4c   : > { %891 = vperm.xlu1 %1646, %v883_v37  }
  0xaa   : > { %v399_v40 = vpop.permute.xlu0 %398 }
  0xab   : > { %v409_v39 = vpop.permute.xlu1 %408 }
  0xae   : > { %v404_v42 = vpop.permute.xlu0 %403 }
  0xaf   : > { %v414_v41 = vpop.permute.xlu1 %413 }
  0xb2   : > { %v419_v44 = vpop.permute.xlu0 %418 }
  0xb3   : > { %v424_v43 = vpop.permute.xlu1 %423 }
  0xb6   : > { %v429_v53 = vpop.permute.xlu0 %428 }
  0xb7   : > { %v434_v50 = vpop.permute.xlu1 %433 }
  0xba   : > { %v439_v2 = vpop.permute.xlu0 %438 }
  0xbb   : > { %v444_v63 = vpop.permute.xlu1 %443 }
  0xbe   : > { %v449_v14 = vpop.permute.xlu0 %448 }
  0xbf   : > { %v454_v11 = vpop.permute.xlu1 %453 }
  0xc2   : > { %v459_v27 = vpop.permute.xlu0 %458 }
  0xc3   : > { %v464_v24 = vpop.permute.xlu1 %463 }
  0xc7   : > { %v474_v36 = vpop.permute.xlu1 %473 }
  0xfd   : > { %v1340_v45 = vpop.f32.mrb[0].mxu0 }
  0xfe   : > { %v597_v46 = vadd.f32 %v1340_v45, %v404_v42  ;;  %v591_v47 = vpop.f32.mrb[1].mxu0 }
  0xff   : > { %v592_v48 = vadd.f32 %v591_v47, %v399_v40  ;;  %v881_v47 = vld [vmem:[%s2128_s5 + $0x8] sm:$0xff] }
 0x100   : > { %v671_v49 = vmax.f32 %v597_v46, 0.0 }
 0x101   : > { %v670_v51 = vmax.f32 %v592_v48, 0.0  ;;  %v1343_v52 = vpop.f32.mrb[2].mxu0  ;;  %v687_v48 = vld [vmem:[#allocation2 + $0x8] sm:$0xff] }
 0x102   : > { %v607_v54 = vadd.f32 %v1343_v52, %v414_v41  ;;  %v601_v55 = vpop.f32.mrb[3].mxu0 }
 0x103   : > { %v1504_v56 = vpack.c.bf16 %v671_v49, %v670_v51  ;;  %v602_v57 = vadd.f32 %v601_v55, %v409_v39  ;;  %1394 = vmatprep.mubr.f32.mxu1 %v670_v51  ;;  %v469_v39 = vpop.permute.xlu0 %468  ;;  %v688_v55 = vld [vmem:[#allocation2 + $0x10] sm:$0xff] }
 0x104   : > { %v673_v58 = vmax.f32 %v607_v54, 0.0  ;;  %1395 = vmatmul.mubr.f32.vlgmr.msra.gmra.mrb[0].mxu1 %v671_v49  ;;  %v686_v49 = vld [vmem:[#allocation2] sm:$0xff]  ;;  %v689_v54 = vld [vmem:[#allocation2 + $0x18] sm:$0xff] }
 0x105   : > { %v672_v59 = vmax.f32 %v602_v57, 0.0  ;;  %v1346_v60 = vpop.f32.mrb[4].mxu0  ;;  %1505 = vmatprep.subr.bf16.mxu0 %v1504_v56 }
 0x106   : > { %v617_v61 = vadd.f32 %v1346_v60, %v424_v43  ;;  %v611_v62 = vpop.f32.mrb[5].mxu0  ;;  %1507 = vmatpush3.bf16.msra.mxu0 %v1504_v56  ;;  %v691_v60 = vld [vmem:[#allocation2 + $0x28] sm:$0xff] }
 0x107   : > { %v1508_v0 = vpack.c.bf16 %v673_v58, %v672_v59  ;;  %v612_v1 = vadd.f32 %v611_v62, %v419_v44  ;;  %1397 = vmatprep.mubr.f32.mxu1 %v672_v59 }
 0x108   : > { %v675_v3 = vmax.f32 %v617_v61, 0.0  ;;  %1398 = vmatmul.mubr.f32.gmra.mrb[2].mxu1 %v673_v58  ;;  %v690_v61 = vld [vmem:[#allocation2 + $0x20] sm:$0xff] }
 0x109   : > { %v674_v4 = vmax.f32 %v612_v1, 0.0  ;;  %v1349_v5 = vpop.f32.mrb[6].mxu0  ;;  %1509 = vmatprep.subr.bf16.mxu0 %v1508_v0 }
 0x10a   : > { %v627_v6 = vadd.f32 %v1349_v5, %v434_v50  ;;  %v621_v7 = vpop.f32.mrb[7].mxu0  ;;  %1511 = vmatpush3.bf16.msra.mxu0 %v1508_v0 }
 0x10b   : > { %v1512_v8 = vpack.c.bf16 %v675_v3, %v674_v4  ;;  %v622_v9 = vadd.f32 %v621_v7, %v429_v53  ;;  %1400 = vmatprep.mubr.f32.mxu1 %v674_v4 }
 0x10c   : > { %v677_v10 = vmax.f32 %v627_v6, 0.0  ;;  %1401 = vmatmul.mubr.f32.gmra.mrb[4].mxu1 %v675_v3  ;;  %v692_v3 = vld [vmem:[#allocation2 + $0x30] sm:$0xff] }
 0x10d   : > { %v676_v12 = vmax.f32 %v622_v9, 0.0  ;;  %v1352_v13 = vpop.f32.mrb[8].mxu0  ;;  %1513 = vmatprep.subr.bf16.mxu0 %v1512_v8  ;;  %v694_v9 = vld [vmem:[#allocation2 + $0x40] sm:$0xff] }
 0x10e   : > { %v637_v15 = vadd.f32 %v1352_v13, %v444_v63  ;;  %v631_v16 = vpop.f32.mrb[9].mxu0  ;;  %1515 = vmatpush3.bf16.msra.mxu0 %v1512_v8  ;;  %v695_v8 = vld [vmem:[#allocation2 + $0x48] sm:$0xff] }
 0x10f   : > { %v1516_v17 = vpack.c.bf16 %v677_v10, %v676_v12  ;;  %v632_v18 = vadd.f32 %v631_v16, %v439_v2  ;;  %1403 = vmatprep.mubr.f32.mxu1 %v676_v12  ;;  %v693_v2 = vld [vmem:[#allocation2 + $0x38] sm:$0xff] }
 0x110   : > { %v679_v19 = vmax.f32 %v637_v15, 0.0  ;;  %1404 = vmatmul.mubr.f32.gmra.mrb[6].mxu1 %v677_v10  ;;  %v696_v15 = vld [vmem:[#allocation2 + $0x50] sm:$0xff] }
 0x111   : > { %v678_v20 = vmax.f32 %v632_v18, 0.0  ;;  %v1355_v21 = vpop.f32.mrb[10].mxu0  ;;  %1517 = vmatprep.subr.bf16.mxu0 %v1516_v17 }
 0x112   : > { %v647_v22 = vadd.f32 %v1355_v21, %v454_v11  ;;  %v641_v23 = vpop.f32.mrb[11].mxu0  ;;  %1519 = vmatpush3.bf16.msra.mxu0 %v1516_v17  ;;  %v698_v21 = vld [vmem:[#allocation2 + $0x60] sm:$0xff] }
 0x113   : > { %v1520_v25 = vpack.c.bf16 %v679_v19, %v678_v20  ;;  %v642_v26 = vadd.f32 %v641_v23, %v449_v14  ;;  %1406 = vmatprep.mubr.f32.mxu1 %v678_v20  ;;  %v697_v14 = vld [vmem:[#allocation2 + $0x58] sm:$0xff]  ;;  %v699_v20 = vld [vmem:[#allocation2 + $0x68] sm:$0xff] }
 0x114   : > { %v681_v28 = vmax.f32 %v647_v22, 0.0  ;;  %1407 = vmatmul.mubr.f32.gmra.mrb[8].mxu1 %v679_v19 }
 0x115   : > { %v680_v29 = vmax.f32 %v642_v26, 0.0  ;;  %v1358_v30 = vpop.f32.mrb[12].mxu0  ;;  %1521 = vmatprep.subr.bf16.mxu0 %v1520_v25  ;;  %v701_v26 = vld [vmem:[#allocation2 + $0x78] sm:$0xff] }
 0x116   : > { %v657_v31 = vadd.f32 %v1358_v30, %v464_v24  ;;  %v651_v32 = vpop.f32.mrb[13].mxu0  ;;  %1523 = vmatpush3.bf16.msra.mxu0 %v1520_v25 }
 0x117   : > { %v1524_v33 = vpack.c.bf16 %v681_v28, %v680_v29  ;;  %v652_v34 = vadd.f32 %v651_v32, %v459_v27  ;;  %1409 = vmatprep.mubr.f32.mxu1 %v680_v29  ;;  %v700_v27 = vld [vmem:[#allocation2 + $0x70] sm:$0xff]  ;;  %v892_v32 = vpop.permute.xlu1 %891 }
 0x118   : > { %v683_v35 = vmax.f32 %v657_v31, 0.0  ;;  %1410 = vmatmul.mubr.f32.gmra.mrb[10].mxu1 %v681_v28 }
 0x119   : > { %v682_v37 = vmax.f32 %v652_v34, 0.0  ;;  %v1361_v38 = vpop.f32.mrb[14].mxu0  ;;  %1525 = vmatprep.subr.bf16.mxu0 %v1524_v33  ;;  %v887_v34 = vpop.permute.xlu0 %886 }
 0x11a   : > { %v667_v40 = vadd.f32 %v1361_v38, %v474_v36  ;;  %v661_v41 = vpop.f32.mrb[15].mxu0  ;;  %1527 = vmatpush3.bf16.msra.mxu0 %v1524_v33 }
 0x11b   : > { %v1528_v42 = vpack.c.bf16 %v683_v35, %v682_v37  ;;  %v662_v43 = vadd.f32 %v661_v41, %v469_v39  ;;  %1412 = vmatprep.mubr.f32.mxu1 %v682_v37 }
 0x11c   : > { %v685_v44 = vmax.f32 %v667_v40, 0.0  ;;  %1413 = vmatmul.mubr.f32.gmra.mrb[12].mxu1 %v683_v35 }
 0x11d   : > { %v684_v45 = vmax.f32 %v662_v43, 0.0  ;;  %1529 = vmatprep.subr.bf16.mxu0 %v1528_v42 }
 0x11e   : > { %1531 = vmatpush3.bf16.msra.mxu0 %v1528_v42 }
 0x11f   : > { %v1532_v46 = vpack.c.bf16 %v685_v44, %v684_v45  ;;  %1415 = vmatprep.mubr.f32.mxu1 %v684_v45 }
 0x120   : > { %1416 = vmatmul.mubr.f32.gmra.mrb[14].mxu1 %v685_v44 }
 0x121   : > { %1533 = vmatprep.subr.bf16.mxu0 %v1532_v46 }
 0x122   : > { %1535 = vmatpush3.bf16.msra.mxu0 %v1532_v46 }
 0x125   : > { %1451 = vmatmul.mubr.f32.vlgmr.msra.gmra.mrb[16].mxu0 %v881_v47 }
 0x1d7   : > { %v1396_v50 = vpop.f32.mrb[0].mxu1 }
 0x1d8   : > { %v848_v51 = vadd.f32 %v1396_v50, %v687_v48  ;;  %v768_v52 = vpop.f32.mrb[1].mxu1 }
 0x1d9   : > { %v847_v53 = vadd.f32 %v768_v52, %v686_v49 }
 0x1da   : > { %865 = vst.msk [vmem:[#allocation2 + $0x8] sm:$0xff] %vm863_vm2, %v848_v51 }
 0x1db   : > { %864 = vst.msk [vmem:[#allocation2] sm:$0xff] %vm863_vm2, %v847_v53  ;;  %v1399_v56 = vpop.f32.mrb[2].mxu1 }
 0x1dc   : > { %v850_v57 = vadd.f32 %v1399_v56, %v689_v54  ;;  %v778_v58 = vpop.f32.mrb[3].mxu1  ;;  %v1007_v54 = vld [vmem:[%s2126_s3] sm:$0xff] (!%p1244_p1) }
 0x1dd   : > { %v849_v59 = vadd.f32 %v778_v58, %v688_v55  ;;  %1485 = vmatprep.mubr.f32.mxu0 (!%p1244_p1), %v1007_v54 }
 0x1de   : > { %867 = vst.msk [vmem:[#allocation2 + $0x18] sm:$0xff] %vm863_vm2, %v850_v57 }
 0x1df   : > { %866 = vst.msk [vmem:[#allocation2 + $0x10] sm:$0xff] %vm863_vm2, %v849_v59  ;;  %v1402_v62 = vpop.f32.mrb[4].mxu1 }
 0x1e0   : > { %v852_v63 = vadd.f32 %v1402_v62, %v691_v60  ;;  %v788_v0 = vpop.f32.mrb[5].mxu1 }
 0x1e1   : > { %v851_v1 = vadd.f32 %v788_v0, %v690_v61  ;;  %v976_v39 = vld [vmem:[#allocation2 + $0x8] sm:$0xff] (!%p1244_p1) }
 0x1e2   : > { %869 = vst.msk [vmem:[#allocation2 + $0x28] sm:$0xff] %vm863_vm2, %v852_v63  ;;  %v975_v38 = vld [vmem:[#allocation2] sm:$0xff] (!%p1244_p1)  ;;  %v992_v42 = vmul.f32 (!%p1244_p1), 0.00390625, %v976_v39 }
 0x1e3   : > { %868 = vst.msk [vmem:[#allocation2 + $0x20] sm:$0xff] %vm863_vm2, %v851_v1  ;;  %v1405_v4 = vpop.f32.mrb[6].mxu1  ;;  %v991_v41 = vmul.f32 (!%p1244_p1), 0.00390625, %v975_v38 }
 0x1e4   : > { %v854_v5 = vadd.f32 %v1405_v4, %v693_v2  ;;  %v798_v6 = vpop.f32.mrb[7].mxu1 }
 0x1e5   : > { %v853_v7 = vadd.f32 %v798_v6, %v692_v3  ;;  %v978_v43 = vld [vmem:[#allocation2 + $0x18] sm:$0xff] (!%p1244_p1)  ;;  %v1536_v48 = vpack.c.bf16 (!%p1244_p1), %v992_v42, %v991_v41 }
 0x1e6   : > { %871 = vst.msk [vmem:[#allocation2 + $0x38] sm:$0xff] %vm863_vm2, %v854_v5  ;;  %v977_v40 = vld [vmem:[#allocation2 + $0x10] sm:$0xff] (!%p1244_p1)  ;;  %v994_v47 = vmul.f32 (!%p1244_p1), 0.00390625, %v978_v43 }
 0x1e7   : > { %870 = vst.msk [vmem:[#allocation2 + $0x30] sm:$0xff] %vm863_vm2, %v853_v7  ;;  %v1408_v10 = vpop.f32.mrb[8].mxu1  ;;  %v993_v44 = vmul.f32 (!%p1244_p1), 0.00390625, %v977_v40  ;;  %1537 = vmatprep.subr.bf16.mxu0 (!%p1244_p1), %v1536_v48 }
 0x1e8   : > { %v856_v11 = vadd.f32 %v1408_v10, %v695_v8  ;;  %v808_v12 = vpop.f32.mrb[9].mxu1  ;;  %1539 = vmatpush3.bf16.msra.mxu0 (!%p1244_p1), %v1536_v48 }
 0x1e9   : > { %v855_v13 = vadd.f32 %v808_v12, %v694_v9  ;;  %v980_v46 = vld [vmem:[#allocation2 + $0x28] sm:$0xff] (!%p1244_p1)  ;;  %v1540_v51 = vpack.c.bf16 (!%p1244_p1), %v994_v47, %v993_v44 }
 0x1ea   : > { %873 = vst.msk [vmem:[#allocation2 + $0x48] sm:$0xff] %vm863_vm2, %v856_v11  ;;  %v979_v45 = vld [vmem:[#allocation2 + $0x20] sm:$0xff] (!%p1244_p1)  ;;  %v996_v50 = vmul.f32 (!%p1244_p1), 0.00390625, %v980_v46 }
 0x1eb   : > { %872 = vst.msk [vmem:[#allocation2 + $0x40] sm:$0xff] %vm863_vm2, %v855_v13  ;;  %v1411_v16 = vpop.f32.mrb[10].mxu1  ;;  %v995_v49 = vmul.f32 (!%p1244_p1), 0.00390625, %v979_v45  ;;  %1541 = vmatprep.subr.bf16.mxu0 (!%p1244_p1), %v1540_v51 }
 0x1ec   : > { %v858_v17 = vadd.f32 %v1411_v16, %v697_v14  ;;  %v818_v18 = vpop.f32.mrb[11].mxu1  ;;  %1543 = vmatpush3.bf16.msra.mxu0 (!%p1244_p1), %v1540_v51  ;;  %v1010_v16 = vld [vmem:[%s2127_s4 + $0x8] sm:$0xff] (!%p1244_p1) }
 0x1ed   : > { %v857_v19 = vadd.f32 %v818_v18, %v696_v15  ;;  %v982_v53 = vld [vmem:[#allocation2 + $0x38] sm:$0xff] (!%p1244_p1)  ;;  %v1544_v55 = vpack.c.bf16 (!%p1244_p1), %v996_v50, %v995_v49  ;;  %v1008_v15 = vld [vmem:[%s2126_s3 + $0x8] sm:$0xff] (!%p1244_p1) }
 0x1ee   : > { %875 = vst.msk [vmem:[#allocation2 + $0x58] sm:$0xff] %vm863_vm2, %v858_v17  ;;  %v981_v52 = vld [vmem:[#allocation2 + $0x30] sm:$0xff] (!%p1244_p1)  ;;  %v998_v57 = vmul.f32 (!%p1244_p1), 0.00390625, %v982_v53  ;;  %v1009_v17 = vld [vmem:[%s2127_s4] sm:$0xff] (!%p1244_p1) }
 0x1ef   : > { %874 = vst.msk [vmem:[#allocation2 + $0x50] sm:$0xff] %vm863_vm2, %v857_v19  ;;  %v1414_v22 = vpop.f32.mrb[12].mxu1  ;;  %v997_v56 = vmul.f32 (!%p1244_p1), 0.00390625, %v981_v52  ;;  %1545 = vmatprep.subr.bf16.mxu0 (!%p1244_p1), %v1544_v55 }
 0x1f0   : > { %v860_v23 = vadd.f32 %v1414_v22, %v699_v20  ;;  %v828_v24 = vpop.f32.mrb[13].mxu1  ;;  %1547 = vmatpush3.bf16.msra.mxu0 (!%p1244_p1), %v1544_v55 }
 0x1f1   : > { %v859_v25 = vadd.f32 %v828_v24, %v698_v21  ;;  %v984_v59 = vld [vmem:[#allocation2 + $0x48] sm:$0xff] (!%p1244_p1)  ;;  %v1548_v60 = vpack.c.bf16 (!%p1244_p1), %v998_v57, %v997_v56 }
 0x1f2   : > { %877 = vst.msk [vmem:[#allocation2 + $0x68] sm:$0xff] %vm863_vm2, %v860_v23  ;;  %v983_v58 = vld [vmem:[#allocation2 + $0x40] sm:$0xff] (!%p1244_p1)  ;;  %v1000_v62 = vmul.f32 (!%p1244_p1), 0.00390625, %v984_v59 }
 0x1f3   : > { %876 = vst.msk [vmem:[#allocation2 + $0x60] sm:$0xff] %vm863_vm2, %v859_v25  ;;  %v1417_v28 = vpop.f32.mrb[14].mxu1  ;;  %v999_v61 = vmul.f32 (!%p1244_p1), 0.00390625, %v983_v58  ;;  %1549 = vmatprep.subr.bf16.mxu0 (!%p1244_p1), %v1548_v60 }
 0x1f4   : > { %v862_v29 = vadd.f32 %v1417_v28, %v701_v26  ;;  %v838_v30 = vpop.f32.mrb[15].mxu1  ;;  %1551 = vmatpush3.bf16.msra.mxu0 (!%p1244_p1), %v1548_v60 }
 0x1f5   : > { %v861_v31 = vadd.f32 %v838_v30, %v700_v27  ;;  %v986_v0 = vld [vmem:[#allocation2 + $0x58] sm:$0xff] (!%p1244_p1)  ;;  %v1552_v1 = vpack.c.bf16 (!%p1244_p1), %v1000_v62, %v999_v61 }
 0x1f6   : > { %879 = vst.msk [vmem:[#allocation2 + $0x78] sm:$0xff] %vm863_vm2, %v862_v29  ;;  %974 = sbr.rel (%p1244_p1) target bundleno = 735 (0x2df), region = 56  ;;  %v985_v63 = vld [vmem:[#allocation2 + $0x50] sm:$0xff] (!%p1244_p1)  ;;  %v1002_v3 = vmul.f32 (!%p1244_p1), 0.00390625, %v986_v0 }
 0x1f7   : > { %878 = vst.msk [vmem:[#allocation2 + $0x70] sm:$0xff] %vm863_vm2, %v861_v31  ;;  %v1001_v2 = vmul.f32 (!%p1244_p1), 0.00390625, %v985_v63  ;;  %1553 = vmatprep.subr.bf16.mxu0 (!%p1244_p1), %v1552_v1 }
 0x1f8   : > { %v1452_v33 = vpop.f32.mrb[16].mxu0  ;;  %1555 = vmatpush3.bf16.msra.mxu0 (!%p1244_p1), %v1552_v1 }
 0x1f9   : > { %v966_v35 = vadd.f32 %v1452_v33, %v892_v32  ;;  %v960_v36 = vpop.f32.mrb[17].mxu0  ;;  %v988_v5 = vld [vmem:[#allocation2 + $0x68] sm:$0xff] (!%p1244_p1)  ;;  %v1556_v6 = vpack.c.bf16 (!%p1244_p1), %v1002_v3, %v1001_v2 }
 0x1fa   : > { %v961_v37 = vadd.f32 %v960_v36, %v887_v34  ;;  %v987_v4 = vld [vmem:[#allocation2 + $0x60] sm:$0xff] (!%p1244_p1)  ;;  %v1004_v8 = vmul.f32 (!%p1244_p1), 0.00390625, %v988_v5 }
 0x1fb   : > { %970 = vst [vmem:[%s1881_s29 + $0x8] sm:$0xff] %v966_v35  ;;  %v1003_v7 = vmul.f32 (!%p1244_p1), 0.00390625, %v987_v4  ;;  %1557 = vmatprep.subr.bf16.mxu0 (!%p1244_p1), %v1556_v6 }
 0x1fc   : > { %969 = vst [vmem:[%s1881_s29] sm:$0xff] %v961_v37  ;;  %1559 = vmatpush3.bf16.msra.mxu0 (!%p1244_p1), %v1556_v6 }
 0x1fd   : > { %v990_v10 = vld [vmem:[#allocation2 + $0x78] sm:$0xff]  ;;  %v1560_v11 = vpack.c.bf16 %v1004_v8, %v1003_v7 }
 0x1fe   : > { %v989_v9 = vld [vmem:[#allocation2 + $0x70] sm:$0xff]  ;;  %v1006_v13 = vmul.f32 0.00390625, %v990_v10 }
 0x1ff   : > { %v1005_v12 = vmul.f32 0.00390625, %v989_v9  ;;  %1561 = vmatprep.subr.bf16.mxu0 %v1560_v11 }
 0x200   : > { %1563 = vmatpush3.bf16.msra.mxu0 %v1560_v11 }
 0x201   : > { %v1564_v14 = vpack.c.bf16 %v1006_v13, %v1005_v12 }
 0x203   : > { %1565 = vmatprep.subr.bf16.mxu0 %v1564_v14 }
 0x204   : > { %1567 = vmatpush3.bf16.msra.mxu0 %v1564_v14 }
 0x207   : > { %1486 = vmatmul.mubr.f32.vlgmr.msra.gmra.mrb[0].mxu0 %v1008_v15 }
 0x2da   : > { %v1487_v18 = vpop.f32.mrb[0].mxu0 }
 0x2db   : > { %v1083_v19 = vadd.f32 %v1487_v18, %v1010_v16  ;;  %v1077_v20 = vpop.f32.mrb[1].mxu0 }
 0x2dc   : > { %v1078_v21 = vadd.f32 %v1077_v20, %v1009_v17 }
 0x2dd   : > { %1087 = vst.msk [vmem:[%s1876_s16 + $0x8] sm:$0xff] %vm863_vm2, %v1083_v19 }
 0x2de   : > { %1086 = vst.msk [vmem:[%s1876_s16] sm:$0xff] %vm863_vm2, %v1078_v21 }
 0x2df PF: > { %s1246_s17 = sshll.u32 %s1729_s9, 2  ;;  %s1111_s22 = sshll.u32 %s1881_s29, 4  ;;  %s2062_s22 = int_to_ptr.vmem [resolvable:$true] %s1111_s22 }
 0x2e0   : > { %s1108_s20 = sadd.s32 %s1725_s30, %s1246_s17  ;;  %s2071_s16 = scalar_lea.sflag [#allocation4], %s326_s24 }
 0x2e1   : > { %s1247_s21 = sshll.u32 %s1108_s20, 7  ;;  %s1647_s25 = scalar_lea.vmem %s2062_s22, 256 }
 0x2e2   : > { %s2067_s15 = scalar_lea.hbm %s2131_s8, %s1247_s21  ;;  %p1648_p2 = scmp.ne.s32.totalorder %s2062_s22, %s1647_s25 }
 0x2e3   : > { %s1746_s29 = smov [#allocation3]  }
 0x2e4   : > { %p1649_p4 = pnand %p1648_p2, %p1846_p3  ;;  %s1651_s30 = sshll.u32 %s1746_s29, 4  ;;  %s1652_s30 = int_to_ptr.vmem [resolvable:$false] %s1651_s30 }
 0x2e5   : > { %s1653_s9 = scalar_lea.vmem %s1652_s30, 512  ;;  %p1654_p6 = scmp.lt.s32.totalorder %s2062_s22, %s1652_s30 }
 0x2e6   : > { %p1650_p5 = pneg %p1649_p4  ;;  %p1655_p7 = scmp.lt.s32.totalorder %s1653_s9, %s1647_s25 }
 0x2e8   : > { %p1656_p9 = por %p1655_p7, %p1654_p6 }
 0x2ea   : > { %p1657_p10 = pnand %p1656_p9, %p1650_p5 }
 0x2ec   : > { %1660 = shalt.err (!%p1657_p10)
}
 0x2ed   : > { %s1661_s24 = scalar_lea.hbm %s2067_s15, 256  ;;  %s1665_s23 = scalar_lea.hbm %s2131_s8, 1024 }
 0x2ee   : > { %p1662_p11 = scmp.ne.s32.totalorder %s2067_s15, %s1661_s24  ;;  %p1666_p0 = scmp.lt.u32.totalorder %s2067_s15, %s2131_s8 }
 0x2ef   : > { %p1667_p1 = scmp.lt.u32.totalorder %s1665_s23, %s1661_s24  ;;  %p1669_p4 = scmp.lt.u32.totalorder %s1661_s24, %s2067_s15 }
 0x2f0   : > { %p1663_p12 = pnand %p1662_p11, %p1846_p3 }
 0x2f1   : > { %p1668_p2 = por %p1667_p1, %p1666_p0 }
 0x2f2   : > { %p1664_p13 = pneg %p1663_p12 }
 0x2f3   : > { %p1670_p5 = por %p1669_p4, %p1668_p2 }
 0x2f5   : > { %p1671_p6 = pnand %p1670_p5, %p1664_p13 }
 0x2f7   : > { %1674 = shalt.err (!%p1671_p6)
}
 0x2f8   : > { %s1747_s20 = smov 128   ;;  %s1748_s21 = smov 256  }
 0x2f9   : > { %s1749_s10 = smov 8  }
 0x2fa   : > { %1568 = dma.vmem_to_hbm [thread:$0]  (%p1846_p3), %s2062_s22, 256, %s2067_s15, %s2071_s16, %s1747_s20, %s1748_s21, %s1749_s10  }
 0x2fb PF: > { %p1574_p7 = scmp.ge.s32.totalorder %s1741_s12, 2  ;;  %s1134_s11 = sand.u32 1, %s1713_s27  }
 0x2fc   : > { %s1135_s25 = scalar_lea.sflag [#allocation4], %s1134_s11 }
 0x2fd   : > { %p1571_p9 = pnand %p1574_p7, %p1855_p8 }
 0x2ff   : > { %1708 = dma.done.wait (!%p1571_p9), %s1135_s25, 256  }
 0x300   : > { %1710 = vsyncadd (!%p1571_p9), %s1135_s25, 4294967040  ;;  %s22_s12 = sadd.s32 1, %s1741_s12   ;;  %s2145_s29 = sld [smem:[#allocation6_spill]] }
 0x301   : > { %p19_p10 = scmp.ge.s32.totalorder %s22_s12, 6   ;;  %s2146_s30 = sld [smem:[#allocation11_spill]] }
 0x302   : > { %s2147_s9 = sld [smem:[#allocation7_spill]]  ;;  %s2148_s18 = sld [smem:[#allocation8_spill]] }
 0x303   : > { %s2149_s10 = sld [smem:[#allocation9_spill]]  ;;  %s2150_s11 = sld [smem:[#allocation10_spill]] }
 0x304   : > { %s2151_s27 = smov %s1717_s28  ;;  %21 = sbr.rel (!%p19_p10) target bundleno = 5 (0x5), region = 103 }
 0x306   : > { %s2152_s28 = smov %s2145_s29 }
 0x307   : > { %s2153_s29 = smov %s2146_s30 }
 0x308   : > { %s2154_s30 = smov %s2147_s9  ;;  %s2155_s9 = smov %s2148_s18 }
 0x30b   :  { %1140 = vsyncpa [#allocation4], 1 }
 0x30c   :  { %1142 = vsyncpa [#allocation4 + $0x1], 1 }

</bundles_post_ra>
